<compile_context>
chip_gen: v7x
topology: tpu7x:2x2x1
jax: 0.10.0
libtpu: 0.0.40
codegen_flags: <defaults>
</compile_context>

<pallas_src>
import jax
import jax.numpy as jnp
from jax.experimental import pallas as pl
from jax.experimental.pallas import tpu as pltpu

EPS = 1e-5  # PyTorch BatchNorm1d default eps


def _batchnorm_train(h, gamma, beta):
    """Training-mode BN with fused single-pass statistics (biased variance)."""
    inv_n = 1.0 / h.shape[0]
    mean = jnp.sum(h, axis=0, keepdims=True) * inv_n
    ex2 = jnp.sum(h * h, axis=0, keepdims=True) * inv_n
    var = jnp.maximum(ex2 - mean * mean, 0.0)
    scale = jax.lax.rsqrt(var + EPS) * gamma        # (1, F)
    shift = beta - mean * scale                     # (1, F)
    return h * scale + shift


def make_kernel(num_blocks):
    """Kernel args: x, bn0_gamma, bn0_beta,
                    [W_i, gamma_i, beta_i] * num_blocks,
                    W_out, b_out, out_ref
    (hidden-layer Linear biases omitted; they cancel exactly against BN)."""
    def kernel(*refs):
        x_ref, g0_ref, b0_ref = refs[0], refs[1], refs[2]
        out_ref = refs[-1]
        p = refs[3:-1]

        h = _batchnorm_train(x_ref[...], g0_ref[...], b0_ref[...])

        idx = 0
        for _ in range(num_blocks):                 # static unroll (LLO visibility)
            W, g, bt = p[idx], p[idx + 1], p[idx + 2]
            idx += 3
            # Linear bias dropped: per-feature constant removed by BN mean-sub.
            h = jnp.dot(h, W[...], preferred_element_type=jnp.float32)
            h = _batchnorm_train(h, g[...], bt[...])
            h = jnp.maximum(h, 0.0)                 # ReLU
            # Dropout(p=0) -> identity (default dropout_factor=0)

        # Folded output_layer_A @ output_layer_B, zero-padded to lane-dense width.
        W_out, b_out = p[idx], p[idx + 1]
        h = jnp.dot(h, W_out[...], preferred_element_type=jnp.float32) + b_out[...]
        out_ref[...] = jax.nn.sigmoid(h)

    return kernel


def simple_nn_classifier(x, params):
    """Single gridless VMEM-resident pallas_call (everything fits in VMEM;
    full batch in one block keeps BN statistics global / exact)."""
    num_blocks = len(params["blocks"])
    output_f = params["WB"].shape[1]
    lane_pad = max(128, ((output_f + 127) // 128) * 128)

    # Fold the two output linears (no nonlinearity between them): exact.
    W_AB = jnp.dot(params["WA"], params["WB"], preferred_element_type=jnp.float32)
    b_AB = jnp.dot(params["bA"], params["WB"], preferred_element_type=jnp.float32) + params["bB"]
    # Zero-pad to a lane-dense output slab (unmasked vst); sliced off below.
    W_out = jnp.pad(W_AB, ((0, 0), (0, lane_pad - output_f)))
    b_out = jnp.pad(b_AB, ((0, 0), (0, lane_pad - output_f)))

    inputs = [x, params["bn0_gamma"], params["bn0_beta"]]
    for (W, _b, g, bt) in params["blocks"]:
        inputs += [W, g, bt]                        # bias intentionally not passed
    inputs += [W_out, b_out]

    vmem = pl.BlockSpec(memory_space=pltpu.MemorySpace.VMEM)
    out_padded = pl.pallas_call(
        make_kernel(num_blocks),
        out_shape=jax.ShapeDtypeStruct((x.shape[0], lane_pad), jnp.float32),
        in_specs=[vmem] * len(inputs),
        out_specs=vmem,
    )(*inputs)
    return out_padded[:, :output_f]


def reference_forward(x, params):
    """Pure-JAX reference of the ORIGINAL (unfolded) module math, to verify the
    algebraic simplifications in the kernel are exact."""
    def bn(h, g, b):
        m = jnp.mean(h, axis=0, keepdims=True)
        v = jnp.mean((h - m) ** 2, axis=0, keepdims=True)
        return (h - m) / jnp.sqrt(v + EPS) * g + b

    h = bn(x, params["bn0_gamma"], params["bn0_beta"])
    for (W, b, g, bt) in params["blocks"]:
        h = h @ W + b
        h = bn(h, g, bt)
        h = jnp.maximum(h, 0.0)
    h = h @ params["WA"] + params["bA"]
    h = h @ params["WB"] + params["bB"]
    return jax.nn.sigmoid(h)


def init_params(key, input_f, output_f, feature_counts):
    """Deterministic synthetic initialization (weights stored pre-transposed (in,out))."""
    def linear(key, in_f, out_f):
        kw, kb = jax.random.split(key)
        bound = 1.0 / jnp.sqrt(in_f)
        W = jax.random.uniform(kw, (in_f, out_f), jnp.float32, -bound, bound)
        b = jax.random.uniform(kb, (1, out_f), jnp.float32, -bound, bound)
        return W, b

    def bn(key, f):
        kg, kb = jax.random.split(key)
        gamma = 1.0 + 0.1 * jax.random.normal(kg, (1, f), jnp.float32)
        beta = 0.1 * jax.random.normal(kb, (1, f), jnp.float32)
        return gamma, beta

    keys = jax.random.split(key, 2 * len(feature_counts) + 4)
    ki = iter(range(len(keys)))

    params = {}
    params["bn0_gamma"], params["bn0_beta"] = bn(keys[next(ki)], input_f)

    blocks = []
    in_f = input_f
    for f in feature_counts:
        W, b = linear(keys[next(ki)], in_f, f)
        g, bt = bn(keys[next(ki)], f)
        blocks.append((W, b, g, bt))
        in_f = f
    params["blocks"] = blocks

    params["WA"], params["bA"] = linear(keys[next(ki)], feature_counts[-1], output_f)
    params["WB"], params["bB"] = linear(keys[next(ki)], output_f, output_f)
    return params


if __name__ == "__main__":
    # Small shapes consistent with the module's forward: x is (batch, input_f).
    batch, input_f, output_f = 8, 32, 8
    feature_counts = [64, 32]

    key = jax.random.PRNGKey(0)
    kx, kp = jax.random.split(key)
    x = jax.random.normal(kx, (batch, input_f), jnp.float32)
    params = init_params(kp, input_f, output_f, feature_counts)

    out = simple_nn_classifier(x, params)
    out = jax.block_until_ready(out)
    ref = reference_forward(x, params)

    assert out.shape == (batch, output_f)
    assert bool(jnp.all(jnp.isfinite(out)))
    assert bool(jnp.all((out >= 0.0) & (out <= 1.0)))
    # Algebraic optimizations (WA@WB fold, bias drop, fused BN stats) are exact
    # up to float rounding vs. the unfolded reference.
    assert bool(jnp.allclose(out, ref, atol=1e-5, rtol=1e-4))
    print("KERNEL_OK")
</pallas_src>

<mosaic_0001>
module attributes {stable_mosaic.version = 11 : i64} {
  func.func @kernel(%arg0: memref<8x32xf32, #tpu.memory_space<vmem>>, %arg1: memref<1x32xf32, #tpu.memory_space<vmem>>, %arg2: memref<1x32xf32, #tpu.memory_space<vmem>>, %arg3: memref<32x64xf32, #tpu.memory_space<vmem>>, %arg4: memref<1x64xf32, #tpu.memory_space<vmem>>, %arg5: memref<1x64xf32, #tpu.memory_space<vmem>>, %arg6: memref<64x32xf32, #tpu.memory_space<vmem>>, %arg7: memref<1x32xf32, #tpu.memory_space<vmem>>, %arg8: memref<1x32xf32, #tpu.memory_space<vmem>>, %arg9: memref<32x128xf32, #tpu.memory_space<vmem>>, %arg10: memref<1x128xf32, #tpu.memory_space<vmem>>, %arg11: memref<8x128xf32, #tpu.memory_space<vmem>>) attributes {dimension_semantics = [], scalar_prefetch = 0 : i64, scratch_operands = 0 : i64, tpu.core_type = #tpu.core_type<tc>} {
    %c0 = arith.constant 0 : index
    %c0_0 = arith.constant 0 : index
    %0 = vector.load %arg0[%c0, %c0_0] : memref<8x32xf32, #tpu.memory_space<vmem>>, vector<8x32xf32>
    %c0_1 = arith.constant 0 : index
    %c0_2 = arith.constant 0 : index
    %1 = vector.load %arg1[%c0_1, %c0_2] : memref<1x32xf32, #tpu.memory_space<vmem>>, vector<1x32xf32>
    %c0_3 = arith.constant 0 : index
    %c0_4 = arith.constant 0 : index
    %2 = vector.load %arg2[%c0_3, %c0_4] : memref<1x32xf32, #tpu.memory_space<vmem>>, vector<1x32xf32>
    %cst = arith.constant dense<0.000000e+00> : vector<32xf32>
    %3 = vector.multi_reduction <add>, %0, %cst [0] : vector<8x32xf32> to vector<32xf32>
    %4 = vector.shape_cast %3 : vector<32xf32> to vector<1x32xf32>
    %cst_5 = arith.constant 1.250000e-01 : f32
    %5 = vector.broadcast %cst_5 : f32 to vector<1x32xf32>
    %6 = arith.mulf %4, %5 : vector<1x32xf32>
    %7 = arith.mulf %0, %0 : vector<8x32xf32>
    %cst_6 = arith.constant dense<0.000000e+00> : vector<32xf32>
    %8 = vector.multi_reduction <add>, %7, %cst_6 [0] : vector<8x32xf32> to vector<32xf32>
    %9 = vector.shape_cast %8 : vector<32xf32> to vector<1x32xf32>
    %cst_7 = arith.constant 1.250000e-01 : f32
    %10 = vector.broadcast %cst_7 : f32 to vector<1x32xf32>
    %11 = arith.mulf %9, %10 : vector<1x32xf32>
    %12 = arith.mulf %6, %6 : vector<1x32xf32>
    %13 = arith.subf %11, %12 : vector<1x32xf32>
    %cst_8 = arith.constant 0.000000e+00 : f32
    %14 = vector.broadcast %cst_8 : f32 to vector<1x32xf32>
    %15 = arith.maximumf %13, %14 : vector<1x32xf32>
    %cst_9 = arith.constant 9.99999974E-6 : f32
    %16 = vector.broadcast %cst_9 : f32 to vector<1x32xf32>
    %17 = arith.addf %15, %16 : vector<1x32xf32>
    %18 = math.rsqrt %17 : vector<1x32xf32>
    %19 = arith.mulf %18, %1 : vector<1x32xf32>
    %20 = arith.mulf %6, %19 : vector<1x32xf32>
    %21 = arith.subf %2, %20 : vector<1x32xf32>
    %22 = vector.broadcast %19 : vector<1x32xf32> to vector<8x32xf32>
    %23 = arith.mulf %0, %22 : vector<8x32xf32>
    %24 = vector.broadcast %21 : vector<1x32xf32> to vector<8x32xf32>
    %25 = arith.addf %23, %24 : vector<8x32xf32>
    %c0_10 = arith.constant 0 : index
    %c0_11 = arith.constant 0 : index
    %26 = vector.load %arg3[%c0_10, %c0_11] : memref<32x64xf32, #tpu.memory_space<vmem>>, vector<32x64xf32>
    %cst_12 = arith.constant dense<0.000000e+00> : vector<8x64xf32>
    %27 = tpu.matmul %25, %26, %cst_12 {dimension_numbers = #tpu.dot_dimension_numbers<[1], [0], [0], [1], [0, 0, 1, 1], [], []>} : vector<8x32xf32>, vector<32x64xf32>, vector<8x64xf32> -> vector<8x64xf32>
    %c0_13 = arith.constant 0 : index
    %c0_14 = arith.constant 0 : index
    %28 = vector.load %arg4[%c0_13, %c0_14] : memref<1x64xf32, #tpu.memory_space<vmem>>, vector<1x64xf32>
    %c0_15 = arith.constant 0 : index
    %c0_16 = arith.constant 0 : index
    %29 = vector.load %arg5[%c0_15, %c0_16] : memref<1x64xf32, #tpu.memory_space<vmem>>, vector<1x64xf32>
    %cst_17 = arith.constant dense<0.000000e+00> : vector<64xf32>
    %30 = vector.multi_reduction <add>, %27, %cst_17 [0] : vector<8x64xf32> to vector<64xf32>
    %31 = vector.shape_cast %30 : vector<64xf32> to vector<1x64xf32>
    %cst_18 = arith.constant 1.250000e-01 : f32
    %32 = vector.broadcast %cst_18 : f32 to vector<1x64xf32>
    %33 = arith.mulf %31, %32 : vector<1x64xf32>
    %34 = arith.mulf %27, %27 : vector<8x64xf32>
    %cst_19 = arith.constant dense<0.000000e+00> : vector<64xf32>
    %35 = vector.multi_reduction <add>, %34, %cst_19 [0] : vector<8x64xf32> to vector<64xf32>
    %36 = vector.shape_cast %35 : vector<64xf32> to vector<1x64xf32>
    %cst_20 = arith.constant 1.250000e-01 : f32
    %37 = vector.broadcast %cst_20 : f32 to vector<1x64xf32>
    %38 = arith.mulf %36, %37 : vector<1x64xf32>
    %39 = arith.mulf %33, %33 : vector<1x64xf32>
    %40 = arith.subf %38, %39 : vector<1x64xf32>
    %cst_21 = arith.constant 0.000000e+00 : f32
    %41 = vector.broadcast %cst_21 : f32 to vector<1x64xf32>
    %42 = arith.maximumf %40, %41 : vector<1x64xf32>
    %cst_22 = arith.constant 9.99999974E-6 : f32
    %43 = vector.broadcast %cst_22 : f32 to vector<1x64xf32>
    %44 = arith.addf %42, %43 : vector<1x64xf32>
    %45 = math.rsqrt %44 : vector<1x64xf32>
    %46 = arith.mulf %45, %28 : vector<1x64xf32>
    %47 = arith.mulf %33, %46 : vector<1x64xf32>
    %48 = arith.subf %29, %47 : vector<1x64xf32>
    %49 = vector.broadcast %46 : vector<1x64xf32> to vector<8x64xf32>
    %50 = arith.mulf %27, %49 : vector<8x64xf32>
    %51 = vector.broadcast %48 : vector<1x64xf32> to vector<8x64xf32>
    %52 = arith.addf %50, %51 : vector<8x64xf32>
    %cst_23 = arith.constant 0.000000e+00 : f32
    %53 = vector.broadcast %cst_23 : f32 to vector<8x64xf32>
    %54 = arith.maximumf %52, %53 : vector<8x64xf32>
    %c0_24 = arith.constant 0 : index
    %c0_25 = arith.constant 0 : index
    %55 = vector.load %arg6[%c0_24, %c0_25] : memref<64x32xf32, #tpu.memory_space<vmem>>, vector<64x32xf32>
    %cst_26 = arith.constant dense<0.000000e+00> : vector<8x32xf32>
    %56 = tpu.matmul %54, %55, %cst_26 {dimension_numbers = #tpu.dot_dimension_numbers<[1], [0], [0], [1], [0, 0, 1, 1], [], []>} : vector<8x64xf32>, vector<64x32xf32>, vector<8x32xf32> -> vector<8x32xf32>
    %c0_27 = arith.constant 0 : index
    %c0_28 = arith.constant 0 : index
    %57 = vector.load %arg7[%c0_27, %c0_28] : memref<1x32xf32, #tpu.memory_space<vmem>>, vector<1x32xf32>
    %c0_29 = arith.constant 0 : index
    %c0_30 = arith.constant 0 : index
    %58 = vector.load %arg8[%c0_29, %c0_30] : memref<1x32xf32, #tpu.memory_space<vmem>>, vector<1x32xf32>
    %cst_31 = arith.constant dense<0.000000e+00> : vector<32xf32>
    %59 = vector.multi_reduction <add>, %56, %cst_31 [0] : vector<8x32xf32> to vector<32xf32>
    %60 = vector.shape_cast %59 : vector<32xf32> to vector<1x32xf32>
    %cst_32 = arith.constant 1.250000e-01 : f32
    %61 = vector.broadcast %cst_32 : f32 to vector<1x32xf32>
    %62 = arith.mulf %60, %61 : vector<1x32xf32>
    %63 = arith.mulf %56, %56 : vector<8x32xf32>
    %cst_33 = arith.constant dense<0.000000e+00> : vector<32xf32>
    %64 = vector.multi_reduction <add>, %63, %cst_33 [0] : vector<8x32xf32> to vector<32xf32>
    %65 = vector.shape_cast %64 : vector<32xf32> to vector<1x32xf32>
    %cst_34 = arith.constant 1.250000e-01 : f32
    %66 = vector.broadcast %cst_34 : f32 to vector<1x32xf32>
    %67 = arith.mulf %65, %66 : vector<1x32xf32>
    %68 = arith.mulf %62, %62 : vector<1x32xf32>
    %69 = arith.subf %67, %68 : vector<1x32xf32>
    %cst_35 = arith.constant 0.000000e+00 : f32
    %70 = vector.broadcast %cst_35 : f32 to vector<1x32xf32>
    %71 = arith.maximumf %69, %70 : vector<1x32xf32>
    %cst_36 = arith.constant 9.99999974E-6 : f32
    %72 = vector.broadcast %cst_36 : f32 to vector<1x32xf32>
    %73 = arith.addf %71, %72 : vector<1x32xf32>
    %74 = math.rsqrt %73 : vector<1x32xf32>
    %75 = arith.mulf %74, %57 : vector<1x32xf32>
    %76 = arith.mulf %62, %75 : vector<1x32xf32>
    %77 = arith.subf %58, %76 : vector<1x32xf32>
    %78 = vector.broadcast %75 : vector<1x32xf32> to vector<8x32xf32>
    %79 = arith.mulf %56, %78 : vector<8x32xf32>
    %80 = vector.broadcast %77 : vector<1x32xf32> to vector<8x32xf32>
    %81 = arith.addf %79, %80 : vector<8x32xf32>
    %cst_37 = arith.constant 0.000000e+00 : f32
    %82 = vector.broadcast %cst_37 : f32 to vector<8x32xf32>
    %83 = arith.maximumf %81, %82 : vector<8x32xf32>
    %c0_38 = arith.constant 0 : index
    %c0_39 = arith.constant 0 : index
    %84 = vector.load %arg9[%c0_38, %c0_39] : memref<32x128xf32, #tpu.memory_space<vmem>>, vector<32x128xf32>
    %cst_40 = arith.constant dense<0.000000e+00> : vector<8x128xf32>
    %85 = tpu.matmul %83, %84, %cst_40 {dimension_numbers = #tpu.dot_dimension_numbers<[1], [0], [0], [1], [0, 0, 1, 1], [], []>} : vector<8x32xf32>, vector<32x128xf32>, vector<8x128xf32> -> vector<8x128xf32>
    %c0_41 = arith.constant 0 : index
    %c0_42 = arith.constant 0 : index
    %86 = vector.load %arg10[%c0_41, %c0_42] : memref<1x128xf32, #tpu.memory_space<vmem>>, vector<1x128xf32>
    %87 = vector.broadcast %86 : vector<1x128xf32> to vector<8x128xf32>
    %88 = arith.addf %85, %87 : vector<8x128xf32>
    %89 = arith.negf %88 : vector<8x128xf32>
    %90 = math.exp %89 : vector<8x128xf32>
    %cst_43 = arith.constant 1.000000e+00 : f32
    %91 = vector.broadcast %cst_43 : f32 to vector<8x128xf32>
    %92 = arith.addf %91, %90 : vector<8x128xf32>
    %93 = arith.divf %91, %92 : vector<8x128xf32>
    %c0_44 = arith.constant 0 : index
    %c0_45 = arith.constant 0 : index
    %94 = vector.load %arg11[%c0_44, %c0_45] : memref<8x128xf32, #tpu.memory_space<vmem>>, vector<8x128xf32>
    tpu.vector_store %arg11[%c0_44, %c0_45], %93 {strides = array<i32>} : memref<8x128xf32, #tpu.memory_space<vmem>>, vector<8x128xf32>,
    return
  }
}

</mosaic_0001>

<bundles_post_ra>
// kernel: tpu_custom_call.1
= control target key start
LH: loop header
LB: loop body
LE: loop exit
PB: predicated region body
PF: predicated region fallthrough
CT: control target
= control target key end

     0   :  { %v551_v3 = vmov 0.0|0.0   ;;  %vm552_vm0 = vmmov 0   ;;  %v553_v6 = vmov 0.0   ;;  %vm42_vm1 = vcmask 261120   ;;  %s727_s0 = inlined_call_operand.vmem [shape: f32[8,32], index: 0, kind: input, shape index: {}]   ;;  %s728_s1 = inlined_call_operand.vmem [shape: f32[1,32], index: 1, kind: input, shape index: {}]   ;;  %s729_s2 = inlined_call_operand.vmem [shape: f32[1,32], index: 2, kind: input, shape index: {}]   ;;  %s730_s3 = inlined_call_operand.vmem [shape: f32[32,64], index: 3, kind: input, shape index: {}]   ;;  %s731_s4 = inlined_call_operand.vmem [shape: f32[1,64], index: 4, kind: input, shape index: {}]   ;;  %s732_s5 = inlined_call_operand.vmem [shape: f32[1,64], index: 5, kind: input, shape index: {}]   ;;  %s733_s6 = inlined_call_operand.vmem [shape: f32[64,32], index: 6, kind: input, shape index: {}]   ;;  %s734_s7 = inlined_call_operand.vmem [shape: f32[1,32], index: 7, kind: input, shape index: {}]   ;;  %s735_s8 = inlined_call_operand.vmem [shape: f32[1,32], index: 8, kind: input, shape index: {}]   ;;  %s736_s9 = inlined_call_operand.vmem [shape: f32[32,128], index: 9, kind: input, shape index: {}]   ;;  %s737_s10 = inlined_call_operand.vmem [shape: f32[1,128], index: 10, kind: input, shape index: {}]   ;;  %s738_s11 = inlined_call_operand.hbm [shape: f32[8,128], index: 11, kind: output, shape index: {}]  }
   0x1   :  { %v80_v0 = vld [vmem:[%s730_s3] sm:$0xff]  ;;  %v81_v1 = vld [vmem:[%s730_s3 + $0x8] sm:$0xff]  ;;  %v82_v2 = vld [vmem:[%s730_s3 + $0x10] sm:$0xff]  ;;  %489 = vmatprep.subr.bf16.mxu0 %v551_v3  ;;  %456 = vmatprep.mubr.msk.f32.mxu0 %vm552_vm0, %v553_v6 }
   0x2   :  { %v490_v4 = vpack.c.bf16 %v81_v1, %v80_v0  ;;  %v83_v5 = vld [vmem:[%s730_s3 + $0x18] sm:$0xff]  ;;  %v39_v7 = vld [vmem:[%s727_s0] sm:$0xff]  ;;  %495 = vmatprep.subr.bf16.mxu1 %v551_v3  ;;  %475 = vmatprep.mubr.msk.f32.mxu1 %vm552_vm0, %v553_v6 }
   0x3   :  { %v43_v8 = vsel %vm42_vm1, %v39_v7, 0.0  ;;  %v51_v9 = vmul.f32 %v39_v7, %v39_v7 }
   0x4   :  { %16 = vsyncpa [#allocation3], 0  ;;  %491 = vmatpush3.bf16.msra.mxu0 %v490_v4  ;;  %v493_v10 = vpack.c.bf16 %v83_v5, %v82_v2  ;;  %v44_v11 = vrot.slane %v43_v8, 4  ;;  %v68_v30 = vlaneseq  ;;  %v40_v32 = vld [vmem:[%s728_s1] sm:$0x1]  ;;  %v199_v44 = vld [vmem:[%s733_s6 + $0x8] sm:$0xff] }
   0x5   :  { %492 = vmatprep.subr.bf16.mxu0 %v551_v3  ;;  %v52_v12 = vsel %vm42_vm1, %v51_v9, 0.0  ;;  %v41_v36 = vld [vmem:[%s729_s2] sm:$0x1]  ;;  %v200_v46 = vld [vmem:[%s733_s6 + $0x10] sm:$0xff]  ;;  %v201_v47 = vld [vmem:[%s733_s6 + $0x18] sm:$0xff]  ;;  %vm159_vm2 = vcmask 523264  }
   0x6   :  { %v45_v13 = vadd.f32 %v44_v11, %v43_v8  ;;  %v53_v14 = vrot.slane %v52_v12, 4  ;;  %v69_v31 = vshrl.u32 %v68_v30, 7  ;;  %v198_v43 = vld [vmem:[%s733_s6] sm:$0xff]  ;;  %v499_v48 = vpack.c.bf16 %v201_v47, %v200_v46  ;;  %v203_v50 = vld [vmem:[%s733_s6 + $0x28] sm:$0xff]  ;;  %v204_v52 = vld [vmem:[%s733_s6 + $0x30] sm:$0xff] }
   0x7   :  { %v496_v45 = vpack.c.bf16 %v199_v44, %v198_v43  ;;  %v202_v49 = vld [vmem:[%s733_s6 + $0x20] sm:$0xff]  ;;  %v205_v53 = vld [vmem:[%s733_s6 + $0x38] sm:$0xff] }
   0x8   :  { %494 = vmatpush3.bf16.msra.mxu0 %v493_v10  ;;  %v46_v15 = vrot.slane %v45_v13, 2  ;;  %v54_v16 = vadd.f32 %v53_v14, %v52_v12  ;;  %v641_v33 = vsub.s32 0, %v69_v31  ;;  %v502_v51 = vpack.c.bf16 %v203_v50, %v202_v49  ;;  %v322_v30 = vld [vmem:[%s736_s9 + $0x18] sm:$0xff] }
   0x9   :  { %507 = vmatprep.subr.bf16.mxu0 %v551_v3  ;;  %497 = vmatpush3.bf16.msra.mxu1 %v496_v45  ;;  %v505_v54 = vpack.c.bf16 %v205_v53, %v204_v52 }
   0xa   :  { %v47_v17 = vadd.f32 %v46_v15, %v45_v13  ;;  %v55_v18 = vrot.slane %v54_v16, 2  ;;  %498 = vmatprep.subr.bf16.mxu1 %v551_v3  ;;  %v157_v15 = vld [vmem:[%s731_s4] sm:$0x1] }
   0xc   :  { %v48_v19 = vrot.slane %v47_v17, 1  ;;  %v56_v20 = vadd.f32 %v55_v18, %v54_v16  ;;  %v158_v18 = vld [vmem:[%s732_s5] sm:$0x1] }
   0xd   :  { %500 = vmatpush3.bf16.msra.mxu1 %v499_v48 }
   0xe   :  { %v49_v21 = vadd.f32 %v48_v19, %v47_v17  ;;  %v57_v22 = vrot.slane %v56_v20, 1  ;;  %501 = vmatprep.subr.bf16.mxu1 %v551_v3 }
  0x10   :  { %v50_v23 = vmul.f32 0.125, %v49_v21  ;;  %v58_v24 = vadd.f32 %v57_v22, %v56_v20 }
  0x11   :  { %503 = vmatpush3.bf16.msra.mxu1 %v502_v51 }
  0x12   :  { %v59_v25 = vmul.f32 0.125, %v58_v24  ;;  %v60_v26 = vmul.f32 %v50_v23, %v50_v23  ;;  %504 = vmatprep.subr.bf16.mxu1 %v551_v3 }
  0x14   :  { %v61_v27 = vsub.f32 %v59_v25, %v60_v26  ;;  %v319_v26 = vld [vmem:[%s736_s9] sm:$0xff] }
  0x15   :  { %506 = vmatpush3.bf16.msra.mxu1 %v505_v54 }
  0x16   :  { %v62_v28 = vmax.f32 %v61_v27, 0.0  ;;  %v320_v27 = vld [vmem:[%s736_s9 + $0x8] sm:$0xff] }
  0x18   :  { %v63_v29 = vadd.f32 1e-05, %v62_v28  ;;  %v508_v28 = vpack.c.bf16 %v320_v27, %v319_v26 }
  0x1a   :  { %517 = vrsqrt.f32 %v63_v29  ;;  %v321_v29 = vld [vmem:[%s736_s9 + $0x10] sm:$0xff] }
  0x1b   :  { %v511_v31 = vpack.c.bf16 %v322_v30, %v321_v29 }
  0x24   :  { %v518_v34 = vpop.eup %517 }
  0x25   :  { %v65_v35 = vmul.f32 %v518_v34, %v40_v32 }
  0x27   :  { %v66_v37 = vmul.f32 %v65_v35, %v50_v23  ;;  %v71_v38 = vrot.slane %v65_v35, %v641_v33 }
  0x29   :  { %v67_v39 = vsub.f32 %v41_v36, %v66_v37  ;;  %v72_v40 = vmul.f32 %v71_v38, %v39_v7 }
  0x2b   :  { %v77_v41 = vrot.slane %v67_v39, %v641_v33 }
  0x2d   :  { %v79_v42 = vadd.f32 %v77_v41, %v72_v40 }
  0x2f   :  { %457 = vmatmul.mubr.msk.f32.vlgmr.msra.gmra.mrb[0].mxu0 %vm42_vm1, %v79_v42 }
  0x30   :  { %486 = vmatprep.mubr.msk.f32.mxu0 %vm552_vm0, %v553_v6  ;;  %509 = vmatpush3.bf16.msra.mxu0 %v508_v28 }
  0x31   :  { %510 = vmatprep.subr.bf16.mxu0 %v551_v3 }
  0x34   :  { %512 = vmatpush3.bf16.msra.mxu0 %v511_v31 }
 0x102   :  { %v153_v55 = vpop.f32.mrb[0].mxu0 }
 0x103   :  { %v160_v56 = vsel %vm159_vm2, %v153_v55, 0.0  ;;  %v168_v57 = vmul.f32 %v153_v55, %v153_v55  ;;  %v458_v58 = vpop.f32.mrb[1].mxu0 }
 0x104   :  { %v161_v59 = vrot.slane %v160_v56, 4  ;;  %v280_v58 = vld [vmem:[%s735_s8] sm:$0x1] }
 0x105   :  { %v169_v60 = vsel %vm159_vm2, %v168_v57, 0.0 }
 0x106   :  { %v162_v61 = vadd.f32 %v161_v59, %v160_v56  ;;  %v170_v62 = vrot.slane %v169_v60, 4 }
 0x108   :  { %v163_v63 = vrot.slane %v162_v61, 2  ;;  %v171_v0 = vadd.f32 %v170_v62, %v169_v60 }
 0x10a   :  { %v164_v1 = vadd.f32 %v163_v63, %v162_v61  ;;  %v172_v2 = vrot.slane %v171_v0, 2 }
 0x10c   :  { %v165_v4 = vrot.slane %v164_v1, 1  ;;  %v173_v5 = vadd.f32 %v172_v2, %v171_v0  ;;  %v426_v2 = vld [vmem:[%s737_s10] ss:$0 sm:$0xff] }
 0x10e   :  { %v166_v6 = vadd.f32 %v165_v4, %v164_v1  ;;  %v174_v7 = vrot.slane %v173_v5, 1 }
 0x110   :  { %v167_v8 = vmul.f32 0.125, %v166_v6  ;;  %v175_v9 = vadd.f32 %v174_v7, %v173_v5 }
 0x112   :  { %v176_v10 = vmul.f32 0.125, %v175_v9  ;;  %v177_v11 = vmul.f32 %v167_v8, %v167_v8 }
 0x114   :  { %v178_v12 = vsub.f32 %v176_v10, %v177_v11 }
 0x116   :  { %v179_v13 = vmax.f32 %v178_v12, 0.0 }
 0x118   :  { %v180_v14 = vadd.f32 1e-05, %v179_v13 }
 0x11a   :  { %519 = vrsqrt.f32 %v180_v14 }
 0x124   :  { %v520_v16 = vpop.eup %519 }
 0x125   :  { %v182_v17 = vmul.f32 %v520_v16, %v157_v15 }
 0x127   :  { %v183_v19 = vmul.f32 %v182_v17, %v167_v8  ;;  %v188_v20 = vrot.slane %v182_v17, %v641_v33 }
 0x129   :  { %v184_v21 = vsub.f32 %v158_v18, %v183_v19  ;;  %v189_v22 = vmul.f32 %v188_v20, %v153_v55  ;;  %v279_v55 = vld [vmem:[%s734_s7] sm:$0x1]  ;;  %s554_s7 = smov [#allocation2]  }
 0x12a   :  { %s416_s8 = sshll.u32 %s554_s7, 4  ;;  %s417_s8 = int_to_ptr.vmem [resolvable:$true] %s416_s8 }
 0x12b   :  { %v194_v23 = vrot.slane %v184_v21, %v641_v33  ;;  %s527_s15 = scalar_lea.vmem %s417_s8, 128  ;;  %p532_p1 = scmp.lt.s32.totalorder %s417_s8, %s417_s8 }
 0x12c   :  { %p528_p0 = scmp.ne.s32.totalorder %s417_s8, %s527_s15  ;;  %p533_p2 = scmp.lt.s32.totalorder %s527_s15, %s527_s15 }
 0x12d   :  { %v196_v24 = vadd.f32 %v194_v23, %v189_v22 }
 0x12e   :  { %p534_p3 = por %p533_p2, %p532_p1 }
 0x12f   :  { %v197_v25 = vmax.f32 %v196_v24, 0.0 }
 0x130   :  { %p535_p4 = pnand %p534_p3, %p528_p0 }
 0x131   :  { %476 = vmatmul.mubr.msk.f32.vlgmr.msra.gmra.mrb[0].mxu1 %vm159_vm2, %v197_v25 }
 0x204   :  { %v275_v32 = vpop.f32.mrb[0].mxu1 }
 0x205   :  { %v281_v34 = vsel %vm42_vm1, %v275_v32, 0.0  ;;  %v289_v35 = vmul.f32 %v275_v32, %v275_v32  ;;  %v477_v36 = vpop.f32.mrb[1].mxu1 }
 0x206   :  { %v282_v37 = vrot.slane %v281_v34, 4 }
 0x207   :  { %v290_v38 = vsel %vm42_vm1, %v289_v35, 0.0 }
 0x208   :  { %v283_v39 = vadd.f32 %v282_v37, %v281_v34  ;;  %v291_v3 = vrot.slane %v290_v38, 4 }
 0x20a   :  { %v284_v40 = vrot.slane %v283_v39, 2  ;;  %v292_v41 = vadd.f32 %v291_v3, %v290_v38 }
 0x20c   :  { %v285_v42 = vadd.f32 %v284_v40, %v283_v39  ;;  %v293_v43 = vrot.slane %v292_v41, 2 }
 0x20e   :  { %v286_v44 = vrot.slane %v285_v42, 1  ;;  %v294_v45 = vadd.f32 %v293_v43, %v292_v41 }
 0x210   :  { %v287_v46 = vadd.f32 %v286_v44, %v285_v42  ;;  %v295_v47 = vrot.slane %v294_v45, 1 }
 0x212   :  { %v288_v48 = vmul.f32 0.125, %v287_v46  ;;  %v296_v49 = vadd.f32 %v295_v47, %v294_v45 }
 0x214   :  { %v297_v50 = vmul.f32 0.125, %v296_v49  ;;  %v298_v51 = vmul.f32 %v288_v48, %v288_v48 }
 0x216   :  { %v299_v52 = vsub.f32 %v297_v50, %v298_v51 }
 0x218   :  { %v300_v53 = vmax.f32 %v299_v52, 0.0 }
 0x21a   :  { %v301_v54 = vadd.f32 1e-05, %v300_v53 }
 0x21c   :  { %521 = vrsqrt.f32 %v301_v54 }
 0x226   :  { %v522_v56 = vpop.eup %521 }
 0x227   :  { %v303_v57 = vmul.f32 %v522_v56, %v279_v55 }
 0x229   :  { %v304_v59 = vmul.f32 %v303_v57, %v288_v48  ;;  %v309_v60 = vrot.slane %v303_v57, %v641_v33 }
 0x22b   :  { %v305_v61 = vsub.f32 %v280_v58, %v304_v59  ;;  %v310_v62 = vmul.f32 %v309_v60, %v275_v32 }
 0x22d   :  { %v315_v63 = vrot.slane %v305_v61, %v641_v33 }
 0x22f   :  { %v317_v0 = vadd.f32 %v315_v63, %v310_v62 }
 0x231   :  { %v318_v1 = vmax.f32 %v317_v0, 0.0 }
 0x233   :  { %487 = vmatmul.mubr.msk.f32.vlgmr.msra.gmra.mrb[2].mxu0 %vm42_vm1, %v318_v1 }
 0x306   :  { %v399_v4 = vpop.f32.mrb[2].mxu0 }
 0x307   :  { %v400_v5 = vadd.f32 %v426_v2, %v399_v4  ;;  %v488_v6 = vpop.f32.mrb[3].mxu0 }
 0x309   :  { %v428_v7 = vmul.f32 -1.442695, %v400_v5 }
 0x30b   :  { %523 = vpow2.f32 %v428_v7 }
 0x315   :  { %v524_v8 = vpop.eup %523 }
 0x316   :  { %v406_v9 = vadd.f32 1.0, %v524_v8 }
 0x318   :  { %525 = vrcp.f32 %v406_v9 }
 0x322   :  { %v526_v33 = vpop.eup %525 }
 0x323   :  { %409 = vst [vmem:[#allocation2] sm:$0xff] %v526_v33 }
 0x324   :  { %538 = shalt.err (!%p535_p4)
}
 0x325   :  { %s539_s17 = scalar_lea.hbm %s738_s11, 128 }
 0x326   :  { %p540_p5 = scmp.ne.s32.totalorder %s738_s11, %s539_s17  ;;  %p543_p6 = scmp.lt.u32.totalorder %s539_s17, %s738_s11 }
 0x328   :  { %p545_p7 = pnand %p543_p6, %p540_p5 }
 0x32a   :  { %548 = shalt.err (!%p545_p7)
}
 0x32b   :  { %419 = dma.vmem_to_hbm [thread:$0]  %s417_s8, 128, %s738_s11, [#allocation3]  }
 0x32c   :  { %549 = dma.done.wait [#allocation3], 128  }
 0x32d   :  { %550 = vsyncadd [#allocation3], 4294967168 }
 0x32e   :  { %423 = vsyncpa [#allocation3], 1 }

</bundles_post_ra>
